<compile_context>
chip_gen: v7x
topology: tpu7x:2x2x1
jax: 0.10.0
libtpu: 0.0.40
codegen_flags: <defaults>
</compile_context>

<pallas_src>
import jax
import jax.numpy as jnp
from jax import lax
from jax.experimental import pallas as pl
from jax.experimental.pallas import tpu as pltpu  # noqa: F401  (not needed for this kernel)

# ----------------------------- config (small) --------------------------------
B = 2        # batch
S = 8        # sequence length
D = 32       # hidden size
H = 2        # attention heads
DH = D // H  # head dim
FF = 4 * D   # MLP hidden
VOCAB = 64
EPS = 1e-5
LANES = 128

# bias-slab row indices (f32 slab, one parameter vector per 128-lane row)
(_LN1G, _LN1B, _BQKV, _BPROJ, _LN2G, _LN2B, _B1, _B2,
 _LNFG, _LNFB, _DECA, _DECB, _DECBIAS) = range(13)
_BIAS_ROWS = 16

# bf16 MXU-weight slab column offsets (128-aligned blocks)
_OFF_QKV, _OFF_PROJ, _OFF_W1 = 0, 128, 256
_WA_COLS = 384


def _layernorm(h, g, b):
    mu = jnp.mean(h, axis=-1, keepdims=True)
    var = jnp.mean((h - mu) ** 2, axis=-1, keepdims=True)
    return (h - mu) * lax.rsqrt(var + EPS) * g + b


# ------------------- fully fused encoder + decision kernel -------------------
def fused_reward_kernel(x_ref, kmask_ref, wa_ref, w2_ref, bias_ref, out_ref):
    x3 = x_ref[...]            # (2B, S, D)  f32 embedded tokens, pair folded into batch
    kmask = kmask_ref[...]     # (2B, S)     f32 additive key-padding mask
    wa = wa_ref[...]           # (D, 384)    bf16 [wqkv | wproj | w1]
    w2 = w2_ref[...]           # (FF, D)     bf16
    bias = bias_ref[...]       # (16, 128)   f32  LN / bias / decision slab

    nbat, seq, dim = x3.shape

    # --- unpack slabs (static value slices; no extra DMAs) ---
    wqkv = wa[:, _OFF_QKV:_OFF_QKV + 3 * dim]        # (D, 3D)
    wproj = wa[:, _OFF_PROJ:_OFF_PROJ + dim]         # (D, D)
    w1 = wa[:, _OFF_W1:_OFF_W1 + FF]                 # (D, FF)

    ln1g, ln1b = bias[_LN1G:_LN1G + 1, :dim], bias[_LN1B:_LN1B + 1, :dim]
    b_qkv = bias[_BQKV:_BQKV + 1, :3 * dim]
    bproj = bias[_BPROJ:_BPROJ + 1, :dim]
    ln2g, ln2b = bias[_LN2G:_LN2G + 1, :dim], bias[_LN2B:_LN2B + 1, :dim]
    b1 = bias[_B1:_B1 + 1, :FF]
    b2 = bias[_B2:_B2 + 1, :dim]
    lnfg, lnfb = bias[_LNFG:_LNFG + 1, :dim], bias[_LNFB:_LNFB + 1, :dim]
    dec_wa = bias[_DECA:_DECA + 1, :dim]
    dec_wb = bias[_DECB:_DECB + 1, :dim]
    dec_bias = bias[_DECBIAS:_DECBIAS + 1, 0:1]

    # --- attention: fused QKV matmul over all positions (one MXU op) ---
    h3 = _layernorm(x3, ln1g, ln1b)                                  # (2B, S, D) f32
    # layout-free reshape: middle dim == 8 sublanes, last dim unchanged
    h2d = h3.reshape(nbat * seq, dim).astype(jnp.bfloat16)           # (2B*S, D) bf16
    qkv = jnp.dot(h2d, wqkv, preferred_element_type=jnp.float32) + b_qkv
    qkv3 = qkv.reshape(nbat, seq, 3 * dim)                           # (2B, S, 3D)

    # NOTE: pools position S-1 unconditionally, matching
    # hidden_states[-1][:, -1, :] in the reference (even if it is a PAD token).
    q_last = qkv3[:, seq - 1, 0:dim]                                 # (2B, D) (1/sqrt(DH) pre-folded)
    k3 = qkv3[:, :, dim:2 * dim]                                     # (2B, S, D)
    v3 = qkv3[:, :, 2 * dim:3 * dim]                                 # (2B, S, D)

    # per-head scores / context on the VPU (no MXU ops in this loop)
    ctx_heads = []
    for hh in range(H):
        lo, hi = hh * DH, (hh + 1) * DH
        qh = q_last[:, lo:hi]                                        # (2B, DH)
        kh = k3[:, :, lo:hi]                                         # (2B, S, DH)
        vh = v3[:, :, lo:hi]                                         # (2B, S, DH)
        s = jnp.sum(qh[:, None, :] * kh, axis=-1) + kmask            # (2B, S)
        m = jnp.max(s, axis=-1, keepdims=True)
        p = jnp.exp(s - m)
        p = p * pl.reciprocal(jnp.sum(p, axis=-1, keepdims=True), approx=True)
        ctx_heads.append(jnp.sum(p[:, :, None] * vh, axis=1))        # (2B, DH)
    ctx = jnp.concatenate(ctx_heads, axis=-1)                        # (2B, D)

    x_last = x3[:, seq - 1, :]                                       # (2B, D)
    attn = jnp.dot(ctx.astype(jnp.bfloat16), wproj,
                   preferred_element_type=jnp.float32)               # one MXU op
    x1 = x_last + attn + bproj

    # --- MLP sub-block (last row only) ---
    h2 = _layernorm(x1, ln2g, ln2b)
    ff = jnp.dot(h2.astype(jnp.bfloat16), w1,
                 preferred_element_type=jnp.float32) + b1
    ff = jax.nn.gelu(ff, approximate=True)                           # GPT-2 "gelu_new"
    y = jnp.dot(ff.astype(jnp.bfloat16), w2,
                preferred_element_type=jnp.float32) + b2
    x2 = x1 + y

    # --- final layer norm + fused decision head (VPU reduce, no host combine) ---
    enc = _layernorm(x2, lnfg, lnfb)                                 # (2B, D)
    enc1 = enc[:B, :]                                                # sequence-1 encodings
    enc2 = enc[B:, :]                                                # sequence-2 encodings
    dec = (jnp.sum(enc1 * dec_wa, axis=-1, keepdims=True)
           + jnp.sum(enc2 * dec_wb, axis=-1, keepdims=True)
           + dec_bias)                                               # (B, 1)
    out_ref[...] = jnp.broadcast_to(dec, (B, LANES))                 # lane-dense store


# ------------------------------- wrapper --------------------------------------
@jax.jit
def reward_core(packed, ids, msk):
    """ids, msk: (2, B, S) int32. Returns decision output (B, 1) f32."""
    two, b, s = ids.shape
    ids2 = ids.reshape(two * b, s)                                   # pair folded into batch
    msk2 = msk.reshape(two * b, s)
    pos = jnp.arange(s, dtype=jnp.int32)
    x = packed["wte"][ids2] + packed["wpe"][pos][None, :, :]         # (2B, S, D) f32
    kmask = (1.0 - msk2.astype(jnp.float32)) * -1e9                  # (2B, S) additive mask

    out = pl.pallas_call(
        fused_reward_kernel,
        out_shape=jax.ShapeDtypeStruct((b, LANES), jnp.float32),
        # single invocation, whole arrays in VMEM (few tens of KiB total)
    )(x, kmask, packed["wA"], packed["w2"], packed["bias_slab"])
    return out[:, :1]                                                # (B, 1)


def reward_model_forward(packed, x):
    """x = ({'input_ids','attention_mask'}, {'input_ids','attention_mask'}, label)"""
    ids1 = jnp.squeeze(x[0]["input_ids"], axis=1)
    msk1 = jnp.squeeze(x[0]["attention_mask"], axis=1)
    ids2 = jnp.squeeze(x[1]["input_ids"], axis=1)
    msk2 = jnp.squeeze(x[1]["attention_mask"], axis=1)
    ids = jnp.stack([ids1, ids2], axis=0)   # (2, B, S)
    msk = jnp.stack([msk1, msk2], axis=0)   # (2, B, S)
    output = reward_core(packed, ids, msk)  # (B, 1)
    label = x[-1]
    return output, label


# -------------------- one-time parameter packing (off hot path) ---------------
def pack_params(params):
    scale = 1.0 / (DH ** 0.5)
    # per-head (H, D, DH) -> (D, H*DH) with head blocks along columns
    wq = jnp.transpose(params["wq"], (1, 0, 2)).reshape(D, H * DH) * scale
    wk = jnp.transpose(params["wk"], (1, 0, 2)).reshape(D, H * DH)
    wv = jnp.transpose(params["wv"], (1, 0, 2)).reshape(D, H * DH)
    wqkv = jnp.concatenate([wq, wk, wv], axis=1)                     # (D, 3D)
    wproj = params["wproj"].reshape(H * DH, D)                       # (D, D)

    wA = jnp.zeros((D, _WA_COLS), jnp.float32)
    wA = wA.at[:, _OFF_QKV:_OFF_QKV + 3 * D].set(wqkv)
    wA = wA.at[:, _OFF_PROJ:_OFF_PROJ + D].set(wproj)
    wA = wA.at[:, _OFF_W1:_OFF_W1 + FF].set(params["w1"])
    wA = wA.astype(jnp.bfloat16)

    w2 = params["w2"].astype(jnp.bfloat16)

    def row(v):
        v = jnp.asarray(v, jnp.float32).reshape(-1)
        return jnp.pad(v, (0, LANES - v.shape[0]))

    b_qkv = jnp.concatenate([params["bq"].reshape(-1) * scale,
                             params["bk"].reshape(-1),
                             params["bv"].reshape(-1)])              # (3D,)
    rows = [
        row(params["ln1g"]), row(params["ln1b"]),
        row(b_qkv), row(params["bproj"]),
        row(params["ln2g"]), row(params["ln2b"]),
        row(params["b1"]), row(params["b2"]),
        row(params["lnfg"]), row(params["lnfb"]),
        row(params["dec_wa"]), row(params["dec_wb"]),
        row(params["dec_bias"]),
    ]
    while len(rows) < _BIAS_ROWS:
        rows.append(row(jnp.zeros((1,), jnp.float32)))
    bias_slab = jnp.stack(rows, axis=0)                              # (16, 128) f32

    return {"wte": params["wte"], "wpe": params["wpe"],
            "wA": wA, "w2": w2, "bias_slab": bias_slab}


# ----------------------------- deterministic init -----------------------------
def init_params(key):
    ks = jax.random.split(key, 10)
    n = lambda k, shape: (0.02 * jax.random.normal(k, shape)).astype(jnp.float32)
    return {
        "wte":   n(ks[0], (VOCAB, D)),
        "wpe":   n(ks[1], (S, D)),
        "ln1g":  jnp.ones((1, D), jnp.float32),
        "ln1b":  jnp.zeros((1, D), jnp.float32),
        "wq":    n(ks[2], (H, D, DH)),
        "wk":    n(ks[3], (H, D, DH)),
        "wv":    n(ks[4], (H, D, DH)),
        "bq":    jnp.zeros((H, 1, DH), jnp.float32),
        "bk":    jnp.zeros((H, 1, DH), jnp.float32),
        "bv":    jnp.zeros((H, 1, DH), jnp.float32),
        "wproj": n(ks[5], (H, DH, D)),
        "bproj": jnp.zeros((1, D), jnp.float32),
        "ln2g":  jnp.ones((1, D), jnp.float32),
        "ln2b":  jnp.zeros((1, D), jnp.float32),
        "w1":    n(ks[6], (D, FF)),
        "b1":    jnp.zeros((1, FF), jnp.float32),
        "w2":    n(ks[7], (FF, D)),
        "b2":    jnp.zeros((1, D), jnp.float32),
        "lnfg":  jnp.ones((1, D), jnp.float32),
        "lnfb":  jnp.zeros((1, D), jnp.float32),
        "dec_wa": n(ks[8], (D, 1)),
        "dec_wb": n(ks[9], (D, 1)),
        "dec_bias": jnp.zeros((1, 1), jnp.float32),
    }


if __name__ == "__main__":
    key = jax.random.PRNGKey(0)
    params = init_params(key)
    packed = pack_params(params)        # one-time packing, off the hot path

    k1, k2, k3 = jax.random.split(jax.random.PRNGKey(1), 3)
    ids1 = jax.random.randint(k1, (B, 1, S), 0, VOCAB, dtype=jnp.int32)
    ids2 = jax.random.randint(k2, (B, 1, S), 0, VOCAB, dtype=jnp.int32)
    # second example has some padding to exercise the attention mask
    mask1 = jnp.ones((B, 1, S), jnp.int32)
    mask2 = jnp.concatenate(
        [jnp.ones((B, 1, S - 2), jnp.int32), jnp.zeros((B, 1, 2), jnp.int32)], axis=-1)
    label = jax.random.randint(k3, (B,), 0, 2, dtype=jnp.int32).astype(jnp.float32)

    x = ({"input_ids": ids1, "attention_mask": mask1},
         {"input_ids": ids2, "attention_mask": mask2},
         label)

    # TODO(synk): embedding gather + mask construction stay in XLA (review item
    # marked optional); could be folded in via scalar prefetch of ids later.
    output, out_label = reward_model_forward(packed, x)
    jax.block_until_ready(output)
    jax.block_until_ready(out_label)
    assert output.shape == (B, 1) and out_label.shape == (B,)
    print("KERNEL_OK")
</pallas_src>

<mosaic_0001>
module attributes {stable_mosaic.version = 11 : i64} {
  func.func @fused_reward_kernel(%arg0: memref<4x8x32xf32, #tpu.memory_space<vmem>>, %arg1: memref<4x8xf32, #tpu.memory_space<vmem>>, %arg2: memref<32x384xbf16, #tpu.memory_space<vmem>>, %arg3: memref<128x32xbf16, #tpu.memory_space<vmem>>, %arg4: memref<16x128xf32, #tpu.memory_space<vmem>>, %arg5: memref<2x128xf32, #tpu.memory_space<vmem>>) attributes {dimension_semantics = [], scalar_prefetch = 0 : i64, scratch_operands = 0 : i64, tpu.core_type = #tpu.core_type<tc>} {
    %c0 = arith.constant 0 : index
    %c0_0 = arith.constant 0 : index
    %c0_1 = arith.constant 0 : index
    %0 = vector.load %arg0[%c0, %c0_0, %c0_1] : memref<4x8x32xf32, #tpu.memory_space<vmem>>, vector<4x8x32xf32>
    %c0_2 = arith.constant 0 : index
    %c0_3 = arith.constant 0 : index
    %1 = vector.load %arg1[%c0_2, %c0_3] : memref<4x8xf32, #tpu.memory_space<vmem>>, vector<4x8xf32>
    %c0_4 = arith.constant 0 : index
    %c0_5 = arith.constant 0 : index
    %2 = vector.load %arg2[%c0_4, %c0_5] : memref<32x384xbf16, #tpu.memory_space<vmem>>, vector<32x384xbf16>
    %c0_6 = arith.constant 0 : index
    %c0_7 = arith.constant 0 : index
    %3 = vector.load %arg3[%c0_6, %c0_7] : memref<128x32xbf16, #tpu.memory_space<vmem>>, vector<128x32xbf16>
    %c0_8 = arith.constant 0 : index
    %c0_9 = arith.constant 0 : index
    %4 = vector.load %arg4[%c0_8, %c0_9] : memref<16x128xf32, #tpu.memory_space<vmem>>, vector<16x128xf32>
    %5 = vector.extract_strided_slice %2 {offsets = [0, 0], sizes = [32, 96], strides = [1, 1]} : vector<32x384xbf16> to vector<32x96xbf16>
    %6 = vector.extract_strided_slice %2 {offsets = [0, 128], sizes = [32, 32], strides = [1, 1]} : vector<32x384xbf16> to vector<32x32xbf16>
    %7 = vector.extract_strided_slice %2 {offsets = [0, 256], sizes = [32, 128], strides = [1, 1]} : vector<32x384xbf16> to vector<32x128xbf16>
    %8 = vector.extract_strided_slice %4 {offsets = [0, 0], sizes = [1, 32], strides = [1, 1]} : vector<16x128xf32> to vector<1x32xf32>
    %9 = vector.extract_strided_slice %4 {offsets = [1, 0], sizes = [1, 32], strides = [1, 1]} : vector<16x128xf32> to vector<1x32xf32>
    %10 = vector.extract_strided_slice %4 {offsets = [2, 0], sizes = [1, 96], strides = [1, 1]} : vector<16x128xf32> to vector<1x96xf32>
    %11 = vector.extract_strided_slice %4 {offsets = [3, 0], sizes = [1, 32], strides = [1, 1]} : vector<16x128xf32> to vector<1x32xf32>
    %12 = vector.extract_strided_slice %4 {offsets = [4, 0], sizes = [1, 32], strides = [1, 1]} : vector<16x128xf32> to vector<1x32xf32>
    %13 = vector.extract_strided_slice %4 {offsets = [5, 0], sizes = [1, 32], strides = [1, 1]} : vector<16x128xf32> to vector<1x32xf32>
    %14 = vector.extract_strided_slice %4 {offsets = [6, 0], sizes = [1, 128], strides = [1, 1]} : vector<16x128xf32> to vector<1x128xf32>
    %15 = vector.extract_strided_slice %4 {offsets = [7, 0], sizes = [1, 32], strides = [1, 1]} : vector<16x128xf32> to vector<1x32xf32>
    %16 = vector.extract_strided_slice %4 {offsets = [8, 0], sizes = [1, 32], strides = [1, 1]} : vector<16x128xf32> to vector<1x32xf32>
    %17 = vector.extract_strided_slice %4 {offsets = [9, 0], sizes = [1, 32], strides = [1, 1]} : vector<16x128xf32> to vector<1x32xf32>
    %18 = vector.extract_strided_slice %4 {offsets = [10, 0], sizes = [1, 32], strides = [1, 1]} : vector<16x128xf32> to vector<1x32xf32>
    %19 = vector.extract_strided_slice %4 {offsets = [11, 0], sizes = [1, 32], strides = [1, 1]} : vector<16x128xf32> to vector<1x32xf32>
    %20 = vector.extract_strided_slice %4 {offsets = [12, 0], sizes = [1, 1], strides = [1, 1]} : vector<16x128xf32> to vector<1x1xf32>
    %cst = arith.constant dense<0.000000e+00> : vector<4x8xf32>
    %21 = vector.multi_reduction <add>, %0, %cst [2] : vector<4x8x32xf32> to vector<4x8xf32>
    %22 = vector.shape_cast %21 : vector<4x8xf32> to vector<4x8x1xf32>
    %cst_10 = arith.constant 3.200000e+01 : f32
    %23 = vector.broadcast %cst_10 : f32 to vector<4x8x1xf32>
    %24 = arith.divf %22, %23 : vector<4x8x1xf32>
    %25 = vector.broadcast %24 : vector<4x8x1xf32> to vector<4x8x32xf32>
    %26 = arith.subf %0, %25 : vector<4x8x32xf32>
    %27 = arith.mulf %26, %26 : vector<4x8x32xf32>
    %cst_11 = arith.constant dense<0.000000e+00> : vector<4x8xf32>
    %28 = vector.multi_reduction <add>, %27, %cst_11 [2] : vector<4x8x32xf32> to vector<4x8xf32>
    %29 = vector.shape_cast %28 : vector<4x8xf32> to vector<4x8x1xf32>
    %cst_12 = arith.constant 3.200000e+01 : f32
    %30 = vector.broadcast %cst_12 : f32 to vector<4x8x1xf32>
    %31 = arith.divf %29, %30 : vector<4x8x1xf32>
    %32 = vector.broadcast %24 : vector<4x8x1xf32> to vector<4x8x32xf32>
    %33 = arith.subf %0, %32 : vector<4x8x32xf32>
    %cst_13 = arith.constant 9.99999974E-6 : f32
    %34 = vector.broadcast %cst_13 : f32 to vector<4x8x1xf32>
    %35 = arith.addf %31, %34 : vector<4x8x1xf32>
    %36 = math.rsqrt %35 : vector<4x8x1xf32>
    %37 = vector.broadcast %36 : vector<4x8x1xf32> to vector<4x8x32xf32>
    %38 = arith.mulf %33, %37 : vector<4x8x32xf32>
    %39 = vector.shape_cast %8 : vector<1x32xf32> to vector<1x1x32xf32>
    %40 = vector.broadcast %39 : vector<1x1x32xf32> to vector<4x8x32xf32>
    %41 = arith.mulf %38, %40 : vector<4x8x32xf32>
    %42 = vector.shape_cast %9 : vector<1x32xf32> to vector<1x1x32xf32>
    %43 = vector.broadcast %42 : vector<1x1x32xf32> to vector<4x8x32xf32>
    %44 = arith.addf %41, %43 : vector<4x8x32xf32>
    %45 = vector.shape_cast %44 : vector<4x8x32xf32> to vector<32x32xf32>
    %46 = arith.truncf %45 : vector<32x32xf32> to vector<32x32xbf16>
    %cst_14 = arith.constant dense<0.000000e+00> : vector<32x96xf32>
    %47 = tpu.matmul %46, %5, %cst_14 {dimension_numbers = #tpu.dot_dimension_numbers<[1], [0], [0], [1], [0, 0, 1, 1], [], []>} : vector<32x32xbf16>, vector<32x96xbf16>, vector<32x96xf32> -> vector<32x96xf32>
    %48 = vector.broadcast %10 : vector<1x96xf32> to vector<32x96xf32>
    %49 = arith.addf %47, %48 : vector<32x96xf32>
    %50 = vector.shape_cast %49 : vector<32x96xf32> to vector<4x8x96xf32>
    %51 = vector.extract_strided_slice %50 {offsets = [0, 7, 0], sizes = [4, 1, 32], strides = [1, 1, 1]} : vector<4x8x96xf32> to vector<4x1x32xf32>
    %52 = vector.shape_cast %51 : vector<4x1x32xf32> to vector<4x32xf32>
    %53 = vector.extract_strided_slice %50 {offsets = [0, 0, 32], sizes = [4, 8, 32], strides = [1, 1, 1]} : vector<4x8x96xf32> to vector<4x8x32xf32>
    %54 = vector.extract_strided_slice %50 {offsets = [0, 0, 64], sizes = [4, 8, 32], strides = [1, 1, 1]} : vector<4x8x96xf32> to vector<4x8x32xf32>
    %55 = vector.extract_strided_slice %52 {offsets = [0, 0], sizes = [4, 16], strides = [1, 1]} : vector<4x32xf32> to vector<4x16xf32>
    %56 = vector.extract_strided_slice %53 {offsets = [0, 0, 0], sizes = [4, 8, 16], strides = [1, 1, 1]} : vector<4x8x32xf32> to vector<4x8x16xf32>
    %57 = vector.extract_strided_slice %54 {offsets = [0, 0, 0], sizes = [4, 8, 16], strides = [1, 1, 1]} : vector<4x8x32xf32> to vector<4x8x16xf32>
    %58 = vector.shape_cast %55 : vector<4x16xf32> to vector<4x1x16xf32>
    %59 = vector.broadcast %58 : vector<4x1x16xf32> to vector<4x8x16xf32>
    %60 = arith.mulf %59, %56 : vector<4x8x16xf32>
    %cst_15 = arith.constant dense<0.000000e+00> : vector<4x8xf32>
    %61 = vector.multi_reduction <add>, %60, %cst_15 [2] : vector<4x8x16xf32> to vector<4x8xf32>
    %62 = arith.addf %61, %1 : vector<4x8xf32>
    %cst_16 = arith.constant dense<0xFF800000> : vector<4xf32>
    %63 = vector.multi_reduction <maximumf>, %62, %cst_16 [1] : vector<4x8xf32> to vector<4xf32>
    %64 = vector.shape_cast %63 : vector<4xf32> to vector<4x1xf32>
    %65 = vector.broadcast %64 : vector<4x1xf32> to vector<4x8xf32>
    %66 = arith.subf %62, %65 : vector<4x8xf32>
    %67 = math.exp %66 : vector<4x8xf32>
    %cst_17 = arith.constant dense<0.000000e+00> : vector<4xf32>
    %68 = vector.multi_reduction <add>, %67, %cst_17 [1] : vector<4x8xf32> to vector<4xf32>
    %69 = vector.shape_cast %68 : vector<4xf32> to vector<4x1xf32>
    %70 = tpu.reciprocal %69 {approx = true} : vector<4x1xf32> -> vector<4x1xf32>
    %71 = vector.broadcast %70 : vector<4x1xf32> to vector<4x8xf32>
    %72 = arith.mulf %67, %71 : vector<4x8xf32>
    %73 = vector.shape_cast %72 : vector<4x8xf32> to vector<4x8x1xf32>
    %74 = vector.broadcast %73 : vector<4x8x1xf32> to vector<4x8x16xf32>
    %75 = arith.mulf %74, %57 : vector<4x8x16xf32>
    %cst_18 = arith.constant dense<0.000000e+00> : vector<4x16xf32>
    %76 = vector.multi_reduction <add>, %75, %cst_18 [1] : vector<4x8x16xf32> to vector<4x16xf32>
    %77 = vector.extract_strided_slice %52 {offsets = [0, 16], sizes = [4, 16], strides = [1, 1]} : vector<4x32xf32> to vector<4x16xf32>
    %78 = vector.extract_strided_slice %53 {offsets = [0, 0, 16], sizes = [4, 8, 16], strides = [1, 1, 1]} : vector<4x8x32xf32> to vector<4x8x16xf32>
    %79 = vector.extract_strided_slice %54 {offsets = [0, 0, 16], sizes = [4, 8, 16], strides = [1, 1, 1]} : vector<4x8x32xf32> to vector<4x8x16xf32>
    %80 = vector.shape_cast %77 : vector<4x16xf32> to vector<4x1x16xf32>
    %81 = vector.broadcast %80 : vector<4x1x16xf32> to vector<4x8x16xf32>
    %82 = arith.mulf %81, %78 : vector<4x8x16xf32>
    %cst_19 = arith.constant dense<0.000000e+00> : vector<4x8xf32>
    %83 = vector.multi_reduction <add>, %82, %cst_19 [2] : vector<4x8x16xf32> to vector<4x8xf32>
    %84 = arith.addf %83, %1 : vector<4x8xf32>
    %cst_20 = arith.constant dense<0xFF800000> : vector<4xf32>
    %85 = vector.multi_reduction <maximumf>, %84, %cst_20 [1] : vector<4x8xf32> to vector<4xf32>
    %86 = vector.shape_cast %85 : vector<4xf32> to vector<4x1xf32>
    %87 = vector.broadcast %86 : vector<4x1xf32> to vector<4x8xf32>
    %88 = arith.subf %84, %87 : vector<4x8xf32>
    %89 = math.exp %88 : vector<4x8xf32>
    %cst_21 = arith.constant dense<0.000000e+00> : vector<4xf32>
    %90 = vector.multi_reduction <add>, %89, %cst_21 [1] : vector<4x8xf32> to vector<4xf32>
    %91 = vector.shape_cast %90 : vector<4xf32> to vector<4x1xf32>
    %92 = tpu.reciprocal %91 {approx = true} : vector<4x1xf32> -> vector<4x1xf32>
    %93 = vector.broadcast %92 : vector<4x1xf32> to vector<4x8xf32>
    %94 = arith.mulf %89, %93 : vector<4x8xf32>
    %95 = vector.shape_cast %94 : vector<4x8xf32> to vector<4x8x1xf32>
    %96 = vector.broadcast %95 : vector<4x8x1xf32> to vector<4x8x16xf32>
    %97 = arith.mulf %96, %79 : vector<4x8x16xf32>
    %cst_22 = arith.constant dense<0.000000e+00> : vector<4x16xf32>
    %98 = vector.multi_reduction <add>, %97, %cst_22 [1] : vector<4x8x16xf32> to vector<4x16xf32>
    %99 = tpu.concatenate %76, %98 in 1 : vector<4x16xf32>, vector<4x16xf32> -> vector<4x32xf32>
    %100 = vector.extract_strided_slice %0 {offsets = [0, 7, 0], sizes = [4, 1, 32], strides = [1, 1, 1]} : vector<4x8x32xf32> to vector<4x1x32xf32>
    %101 = vector.shape_cast %100 : vector<4x1x32xf32> to vector<4x32xf32>
    %102 = arith.truncf %99 : vector<4x32xf32> to vector<4x32xbf16>
    %cst_23 = arith.constant dense<0.000000e+00> : vector<4x32xf32>
    %103 = tpu.matmul %102, %6, %cst_23 {dimension_numbers = #tpu.dot_dimension_numbers<[1], [0], [0], [1], [0, 0, 1, 1], [], []>} : vector<4x32xbf16>, vector<32x32xbf16>, vector<4x32xf32> -> vector<4x32xf32>
    %104 = arith.addf %101, %103 : vector<4x32xf32>
    %105 = vector.broadcast %11 : vector<1x32xf32> to vector<4x32xf32>
    %106 = arith.addf %104, %105 : vector<4x32xf32>
    %cst_24 = arith.constant dense<0.000000e+00> : vector<4xf32>
    %107 = vector.multi_reduction <add>, %106, %cst_24 [1] : vector<4x32xf32> to vector<4xf32>
    %108 = vector.shape_cast %107 : vector<4xf32> to vector<4x1xf32>
    %cst_25 = arith.constant 3.200000e+01 : f32
    %109 = vector.broadcast %cst_25 : f32 to vector<4x1xf32>
    %110 = arith.divf %108, %109 : vector<4x1xf32>
    %111 = vector.broadcast %110 : vector<4x1xf32> to vector<4x32xf32>
    %112 = arith.subf %106, %111 : vector<4x32xf32>
    %113 = arith.mulf %112, %112 : vector<4x32xf32>
    %cst_26 = arith.constant dense<0.000000e+00> : vector<4xf32>
    %114 = vector.multi_reduction <add>, %113, %cst_26 [1] : vector<4x32xf32> to vector<4xf32>
    %115 = vector.shape_cast %114 : vector<4xf32> to vector<4x1xf32>
    %cst_27 = arith.constant 3.200000e+01 : f32
    %116 = vector.broadcast %cst_27 : f32 to vector<4x1xf32>
    %117 = arith.divf %115, %116 : vector<4x1xf32>
    %118 = vector.broadcast %110 : vector<4x1xf32> to vector<4x32xf32>
    %119 = arith.subf %106, %118 : vector<4x32xf32>
    %cst_28 = arith.constant 9.99999974E-6 : f32
    %120 = vector.broadcast %cst_28 : f32 to vector<4x1xf32>
    %121 = arith.addf %117, %120 : vector<4x1xf32>
    %122 = math.rsqrt %121 : vector<4x1xf32>
    %123 = vector.broadcast %122 : vector<4x1xf32> to vector<4x32xf32>
    %124 = arith.mulf %119, %123 : vector<4x32xf32>
    %125 = vector.broadcast %12 : vector<1x32xf32> to vector<4x32xf32>
    %126 = arith.mulf %124, %125 : vector<4x32xf32>
    %127 = vector.broadcast %13 : vector<1x32xf32> to vector<4x32xf32>
    %128 = arith.addf %126, %127 : vector<4x32xf32>
    %129 = arith.truncf %128 : vector<4x32xf32> to vector<4x32xbf16>
    %cst_29 = arith.constant dense<0.000000e+00> : vector<4x128xf32>
    %130 = tpu.matmul %129, %7, %cst_29 {dimension_numbers = #tpu.dot_dimension_numbers<[1], [0], [0], [1], [0, 0, 1, 1], [], []>} : vector<4x32xbf16>, vector<32x128xbf16>, vector<4x128xf32> -> vector<4x128xf32>
    %131 = vector.broadcast %14 : vector<1x128xf32> to vector<4x128xf32>
    %132 = arith.addf %130, %131 : vector<4x128xf32>
    %133 = arith.mulf %132, %132 : vector<4x128xf32>
    %134 = arith.mulf %132, %133 : vector<4x128xf32>
    %cst_30 = arith.constant 4.471500e-02 : f32
    %135 = vector.broadcast %cst_30 : f32 to vector<4x128xf32>
    %136 = arith.mulf %135, %134 : vector<4x128xf32>
    %137 = arith.addf %132, %136 : vector<4x128xf32>
    %cst_31 = arith.constant 0.797884583 : f32
    %138 = vector.broadcast %cst_31 : f32 to vector<4x128xf32>
    %139 = arith.mulf %138, %137 : vector<4x128xf32>
    %140 = math.tanh %139 : vector<4x128xf32>
    %cst_32 = arith.constant 1.000000e+00 : f32
    %141 = vector.broadcast %cst_32 : f32 to vector<4x128xf32>
    %142 = arith.addf %141, %140 : vector<4x128xf32>
    %cst_33 = arith.constant 5.000000e-01 : f32
    %143 = vector.broadcast %cst_33 : f32 to vector<4x128xf32>
    %144 = arith.mulf %143, %142 : vector<4x128xf32>
    %145 = arith.mulf %132, %144 : vector<4x128xf32>
    %146 = arith.truncf %145 : vector<4x128xf32> to vector<4x128xbf16>
    %cst_34 = arith.constant dense<0.000000e+00> : vector<4x32xf32>
    %147 = tpu.matmul %146, %3, %cst_34 {dimension_numbers = #tpu.dot_dimension_numbers<[1], [0], [0], [1], [0, 0, 1, 1], [], []>} : vector<4x128xbf16>, vector<128x32xbf16>, vector<4x32xf32> -> vector<4x32xf32>
    %148 = vector.broadcast %15 : vector<1x32xf32> to vector<4x32xf32>
    %149 = arith.addf %147, %148 : vector<4x32xf32>
    %150 = arith.addf %106, %149 : vector<4x32xf32>
    %cst_35 = arith.constant dense<0.000000e+00> : vector<4xf32>
    %151 = vector.multi_reduction <add>, %150, %cst_35 [1] : vector<4x32xf32> to vector<4xf32>
    %152 = vector.shape_cast %151 : vector<4xf32> to vector<4x1xf32>
    %cst_36 = arith.constant 3.200000e+01 : f32
    %153 = vector.broadcast %cst_36 : f32 to vector<4x1xf32>
    %154 = arith.divf %152, %153 : vector<4x1xf32>
    %155 = vector.broadcast %154 : vector<4x1xf32> to vector<4x32xf32>
    %156 = arith.subf %150, %155 : vector<4x32xf32>
    %157 = arith.mulf %156, %156 : vector<4x32xf32>
    %cst_37 = arith.constant dense<0.000000e+00> : vector<4xf32>
    %158 = vector.multi_reduction <add>, %157, %cst_37 [1] : vector<4x32xf32> to vector<4xf32>
    %159 = vector.shape_cast %158 : vector<4xf32> to vector<4x1xf32>
    %cst_38 = arith.constant 3.200000e+01 : f32
    %160 = vector.broadcast %cst_38 : f32 to vector<4x1xf32>
    %161 = arith.divf %159, %160 : vector<4x1xf32>
    %162 = vector.broadcast %154 : vector<4x1xf32> to vector<4x32xf32>
    %163 = arith.subf %150, %162 : vector<4x32xf32>
    %cst_39 = arith.constant 9.99999974E-6 : f32
    %164 = vector.broadcast %cst_39 : f32 to vector<4x1xf32>
    %165 = arith.addf %161, %164 : vector<4x1xf32>
    %166 = math.rsqrt %165 : vector<4x1xf32>
    %167 = vector.broadcast %166 : vector<4x1xf32> to vector<4x32xf32>
    %168 = arith.mulf %163, %167 : vector<4x32xf32>
    %169 = vector.broadcast %16 : vector<1x32xf32> to vector<4x32xf32>
    %170 = arith.mulf %168, %169 : vector<4x32xf32>
    %171 = vector.broadcast %17 : vector<1x32xf32> to vector<4x32xf32>
    %172 = arith.addf %170, %171 : vector<4x32xf32>
    %173 = vector.extract_strided_slice %172 {offsets = [0, 0], sizes = [2, 32], strides = [1, 1]} : vector<4x32xf32> to vector<2x32xf32>
    %174 = vector.extract_strided_slice %172 {offsets = [2, 0], sizes = [2, 32], strides = [1, 1]} : vector<4x32xf32> to vector<2x32xf32>
    %175 = vector.broadcast %18 : vector<1x32xf32> to vector<2x32xf32>
    %176 = arith.mulf %173, %175 : vector<2x32xf32>
    %cst_40 = arith.constant dense<0.000000e+00> : vector<2xf32>
    %177 = vector.multi_reduction <add>, %176, %cst_40 [1] : vector<2x32xf32> to vector<2xf32>
    %178 = vector.shape_cast %177 : vector<2xf32> to vector<2x1xf32>
    %179 = vector.broadcast %19 : vector<1x32xf32> to vector<2x32xf32>
    %180 = arith.mulf %174, %179 : vector<2x32xf32>
    %cst_41 = arith.constant dense<0.000000e+00> : vector<2xf32>
    %181 = vector.multi_reduction <add>, %180, %cst_41 [1] : vector<2x32xf32> to vector<2xf32>
    %182 = vector.shape_cast %181 : vector<2xf32> to vector<2x1xf32>
    %183 = arith.addf %178, %182 : vector<2x1xf32>
    %184 = vector.broadcast %20 : vector<1x1xf32> to vector<2x1xf32>
    %185 = arith.addf %183, %184 : vector<2x1xf32>
    %186 = vector.shape_cast %185 : vector<2x1xf32> to vector<2x1xf32>
    %187 = vector.broadcast %186 : vector<2x1xf32> to vector<2x128xf32>
    %c0_42 = arith.constant 0 : index
    %c0_43 = arith.constant 0 : index
    %188 = vector.load %arg5[%c0_42, %c0_43] : memref<2x128xf32, #tpu.memory_space<vmem>>, vector<2x128xf32>
    tpu.vector_store %arg5[%c0_42, %c0_43], %187 {strides = array<i32>} : memref<2x128xf32, #tpu.memory_space<vmem>>, vector<2x128xf32>,
    return
  }
}

</mosaic_0001>

<bundles_post_ra>
// kernel: reward_core.1
= control target key start
LH: loop header
LB: loop body
LE: loop exit
PB: predicated region body
PF: predicated region fallthrough
CT: control target
= control target key end

     0   :  { %vm52_vm0 = vcmask 261120   ;;  %v106_v35 = vlaneseq  ;;  %s1373_s6 = smov 96   ;;  %s1374_s7 = smov 112   ;;  %vm231_vm1 = vcmask 130048   ;;  %vm315_vm2 = vcmask 1041409   ;;  %s1722_s0 = inlined_call_operand.vmem [shape: f32[4,8,32], index: 0, kind: input, shape index: {}]   ;;  %s1723_s2 = inlined_call_operand.vmem [shape: bf16[32,384], index: 2, kind: input, shape index: {}]   ;;  %s1724_s4 = inlined_call_operand.vmem [shape: f32[16,128], index: 4, kind: input, shape index: {}]   ;;  %s1725_s1 = inlined_call_operand.vmem [shape: f32[4,8], index: 1, kind: input, shape index: {}]   ;;  %s1726_s3 = inlined_call_operand.vmem [shape: bf16[128,32], index: 3, kind: input, shape index: {}]   ;;  %s1727_s5 = inlined_call_operand.vmem [shape: f32[2,128], index: 5, kind: output, shape index: {}]  }
   0x1   :  { %v1412_v0 = vld [vmem:[%s1722_s0] sm:$0xff]  ;;  %v1417_v1 = vld [vmem:[%s1722_s0 + $0x10] sm:$0xff]  ;;  %v1422_v2 = vld [vmem:[%s1722_s0 + $0x8] sm:$0xff]  ;;  %vm317_vm3 = vcmask 1042434   ;;  %vm319_vm4 = vcmask 1043459   ;;  %vm322_vm5 = vcmask 60416  }
   0x2   :  { %v53_v3 = vsel %vm52_vm0, %v1412_v0, 0.0  ;;  %v59_v4 = vsel %vm52_vm0, %v1417_v1, 0.0  ;;  %v1431_v5 = vld [vmem:[%s1722_s0 + $0x18] sm:$0xff]  ;;  %v56_v6 = vsel %vm52_vm0, %v1422_v2, 0.0  ;;  %v1318_v28 = vld [vmem:[%s1723_s2] ss:$12 sps:$4 sm:$0xff]  }
   0x3   :  { %54 = vadd.xlane.f32.xlu0 %v53_v3  ;;  %60 = vadd.xlane.f32.xlu1 %v59_v4  ;;  %v62_v7 = vsel %vm52_vm0, %v1431_v5, 0.0  ;;  %v1321_v29 = vld [vmem:[%s1723_s2 + $0x18] ss:$12 sps:$4 sm:$0xff]   ;;  %v1452_v41 = vshrl.u32 %v106_v35, 7  ;;  %vm448_vm6 = vcmask 654848   ;;  %vm670_vm7 = vcmask 786048  }
   0x4   :  { %1261 = vmatprep.subr.bf16.mxu0 %v1318_v28  ;;  %v1460_v45 = vld [vmem:[%s1724_s4] sm:$0xff]  ;;  %vm1377_vm8 = vmmov 0   ;;  %s1378_s13 = smov 64   ;;  %vm804_vm9 = vcmask 261127   ;;  %vm808_vm10 = vcmask 256000   ;;  %vm1179_vm11 = vcmask 253952  }
   0x5   :  { %1262 = vmatpush3.bf16.msra.mxu0 %v1318_v28  ;;  %v1455_v44 = vsub.s32 0, %v1452_v41  ;;  %v1465_v49 = vsub.s32 1, %v1452_v41 }
   0x6   :  { %1263 = vmatprep.subr.bf16.mxu0 %v1321_v29 }
   0x7   :  { %57 = vadd.xlane.f32.xlu0 %v56_v6  ;;  %63 = vadd.xlane.f32.xlu1 %v62_v7  ;;  %v109_v48 = vrot.slane %v1460_v45, %v1455_v44  ;;  %v117_v54 = vrot.slane %v1460_v45, %v1465_v49  ;;  %v1472_v7 = vsub.s32 2, %v1452_v41 }
   0x9   :  { %1264 = vmatpush3.bf16.msra.mxu0 %v1321_v29 }
  0x90   :  { %v55_v8 = vpop.xlane.xlu0 %54  ;;  %v61_v9 = vpop.xlane.xlu1 %60 }
  0x91   :  { %v66_v10 = vmul.f32 0.03125, %v55_v8  ;;  %v68_v11 = vmul.f32 0.03125, %v61_v9  ;;  %v127_v8 = vrot.slane %v1460_v45, %v1472_v7 }
  0x93   :  { %v70_v12 = vsub.f32 %v1412_v0, %v66_v10  ;;  %v72_v13 = vsub.f32 %v1417_v1, %v68_v11 }
  0x94   :  { %v58_v14 = vpop.xlane.xlu0 %57  ;;  %v64_v15 = vpop.xlane.xlu1 %63 }
  0x95   :  { %v67_v16 = vmul.f32 0.03125, %v58_v14  ;;  %v69_v17 = vmul.f32 0.03125, %v64_v15  ;;  %v74_v18 = vmul.f32 %v70_v12, %v70_v12  ;;  %v76_v19 = vmul.f32 %v72_v13, %v72_v13 }
  0x97   :  { %v71_v20 = vsub.f32 %v1422_v2, %v67_v16  ;;  %v73_v21 = vsub.f32 %v1431_v5, %v69_v17  ;;  %v78_v22 = vsel %vm52_vm0, %v74_v18, 0.0  ;;  %v84_v23 = vsel %vm52_vm0, %v76_v19, 0.0 }
  0x98   :  { %79 = vadd.xlane.f32.xlu0 %v78_v22  ;;  %v1489_v17 = vsub.s32 7, %v1452_v41 }
  0x99   :  { %v75_v24 = vmul.f32 %v71_v20, %v71_v20  ;;  %v77_v25 = vmul.f32 %v73_v21, %v73_v21 }
  0x9b   :  { %v81_v26 = vsel %vm52_vm0, %v75_v24, 0.0  ;;  %v87_v27 = vsel %vm52_vm0, %v77_v25, 0.0 }
  0x9c   :  { %85 = vadd.xlane.f32.xlu0 %v84_v23  ;;  %82 = vadd.xlane.f32.xlu1 %v81_v26 }
  0xa0   :  { %88 = vadd.xlane.f32.xlu1 %v87_v27 }
 0x125   :  { %v80_v30 = vpop.xlane.xlu0 %79 }
 0x126   :  { %v90_v31 = vmul.f32 0.03125, %v80_v30 }
 0x128   :  { %v94_v32 = vadd.f32 1e-05, %v90_v31 }
 0x129   :  { %v83_v33 = vpop.xlane.xlu1 %82  ;;  %v86_v34 = vpop.xlane.xlu0 %85 }
 0x12a   :  { %1334 = vrsqrt.f32 %v94_v32  ;;  %v91_v36 = vmul.f32 0.03125, %v83_v33  ;;  %v92_v37 = vmul.f32 0.03125, %v86_v34 }
 0x12c   :  { %v95_v38 = vadd.f32 1e-05, %v91_v36  ;;  %v96_v39 = vadd.f32 1e-05, %v92_v37 }
 0x12d   :  { %v89_v40 = vpop.xlane.xlu1 %88 }
 0x12e   :  { %1336 = vrsqrt.f32 %v95_v38  ;;  %v93_v42 = vmul.f32 0.03125, %v89_v40 }
 0x12f   :  { %1338 = vrsqrt.f32 %v96_v39 }
 0x130   :  { %v97_v43 = vadd.f32 1e-05, %v93_v42 }
 0x132   :  { %1340 = vrsqrt.f32 %v97_v43 }
 0x134   :  { %v1335_v46 = vpop.eup %1334 }
 0x135   :  { %v102_v47 = vmul.f32 %v1335_v46, %v70_v12  ;;  %v25_v46 = vld [vmem:[%s1725_s1] sm:$0xf] }
 0x137   :  { %v110_v53 = vmul.f32 %v109_v48, %v102_v47  ;;  %v255_v47 = vrot.slane %v25_v46, %v1465_v49 }
 0x138   :  { %v1337_v50 = vpop.eup %1336 }
 0x139   :  { %v1339_v51 = vpop.eup %1338  ;;  %v103_v52 = vmul.f32 %v1337_v50, %v71_v20  ;;  %v118_v59 = vadd.f32 %v117_v54, %v110_v53  ;;  %v1375_v50 = vmov 0  }
 0x13a   :  { %v104_v55 = vmul.f32 %v1339_v51, %v72_v13  ;;  %1312 = vset.pattern.permute.xlu0 %v1375_v50  ;;  %1311 = vset.pattern.permute.xlu1 %v1375_v50  ;;  %v262_v51 = vrot.slane %v25_v46, %v1472_v7 }
 0x13b   :  { %v111_v56 = vmul.f32 %v109_v48, %v103_v52  ;;  %v1514_v52 = vsub.s32 3, %v1452_v41 }
 0x13c   :  { %v1341_v57 = vpop.eup %1340  ;;  %v112_v61 = vmul.f32 %v109_v48, %v104_v55 }
 0x13d   :  { %v105_v58 = vmul.f32 %v1341_v57, %v73_v21  ;;  %v119_v60 = vadd.f32 %v117_v54, %v111_v56  ;;  %v269_v53 = vrot.slane %v25_v46, %v1514_v52 }
 0x13e   :  { %v120_v3 = vadd.f32 %v117_v54, %v112_v61 }
 0x13f   :  { %v122_v62 = vpack.c.bf16 %v119_v60, %v118_v59  ;;  %v113_v63 = vmul.f32 %v109_v48, %v105_v58  ;;  %v248_v48 = vrot.slane %v25_v46, %v1455_v44 }
 0x141   :  { %1265 = vmatprep.mubr.msk.bf16.mxu0 %vm52_vm0, %v122_v62  ;;  %v121_v4 = vadd.f32 %v117_v54, %v113_v63 }
 0x143   :  { %v123_v6 = vpack.c.bf16 %v121_v4, %v120_v3 }
 0x145   :  { %1266 = vmatmul.mubr.msk.bf16.vlgmr.msra.gmra.mrb[0].mxu0 %vm52_vm0, %v123_v6 }
 0x218   :  { %v1267_v9 = vpop.f32.mrb[0].mxu0 }
 0x219   :  { %v1476_v10 = vadd.f32 %v1267_v9, %v127_v8  ;;  %v180_v11 = vpop.f32.mrb[1].mxu0 }
 0x21a   :  { %v1478_v12 = vadd.f32 %v180_v11, %v127_v8  ;;  %v1268_v13 = vpop.f32.mrb[2].mxu0 }
 0x21b   :  { %219 = vrot.lane.b32.xlu1 %v1476_v10, %s1373_s6  ;;  %v183_v14 = vpop.f32.mrb[3].mxu0  ;;  %v1485_v16 = vadd.f32 %v1268_v13, %v127_v8  ;;  %v206_v23 = vrot.slane %v1476_v10, %v1489_v17 }
 0x21c   :  { %v1481_v15 = vadd.f32 %v183_v14, %v127_v8  ;;  %215 = vrot.lane.b32.xlu0 %v1478_v12, %s1373_s6  ;;  %v198_v19 = vrot.slane %v1478_v12, %v1489_v17 }
 0x21d   :  { %v210_v27 = vrot.slane %v1485_v16, %v1489_v17 }
 0x21e   :  { %v202_v22 = vrot.slane %v1481_v15, %v1489_v17 }
 0x21f   :  { %217 = vrot.lane.b32.xlu1 %v1481_v15, %s1373_s6 }
 0x223   :  { %221 = vrot.lane.b32.xlu1 %v1485_v16, %s1373_s6 }
 0x28d   :  { %v220_v18 = vpop.permute.xlu1 %219 }
 0x28e   :  { %v216_v20 = vpop.permute.xlu0 %215  ;;  %v229_v26 = vmul.f32 %v220_v18, %v206_v23  ;;  %v298_v23 = vand.u32 127, %v106_v35 }
 0x28f   :  { %v227_v21 = vmul.f32 %v216_v20, %v198_v19 }
 0x290   :  { %v238_v31 = vsel %vm231_vm1, %v229_v26, 0.0 }
 0x291   :  { %v218_v24 = vpop.permute.xlu1 %217  ;;  %481 = vrot.lane.b32.xlu0 %v227_v21, %s1374_s7  ;;  %v232_v30 = vsel %vm231_vm1, %v227_v21, 0.0 }
 0x292   :  { %v228_v25 = vmul.f32 %v218_v24, %v202_v22 }
 0x294   :  { %483 = vrot.lane.b32.xlu1 %v228_v25, %s1374_s7  ;;  %v235_v32 = vsel %vm231_vm1, %v228_v25, 0.0 }
 0x295   :  { %v222_v28 = vpop.permute.xlu1 %221  ;;  %485 = vrot.lane.b32.xlu0 %v229_v26, %s1374_s7  ;;  %v1519_v26 = vsub.s32 %v298_v23, %v1452_v41 }
 0x296   :  { %v230_v29 = vmul.f32 %v222_v28, %v210_v27 }
 0x298   :  { %487 = vrot.lane.b32.xlu1 %v230_v29, %s1374_s7  ;;  %v241_v33 = vsel %vm231_vm1, %v230_v29, 0.0 }
 0x2b4   :  { %233 = vadd.xlane.f32.xlu0 %v232_v30 }
 0x2b8   :  { %239 = vadd.xlane.f32.xlu0 %v238_v31 }
 0x2bc   :  { %236 = vadd.xlane.f32.xlu1 %v235_v32  ;;  %242 = vadd.xlane.f32.xlu0 %v241_v33 }
 0x303   :  { %v482_v34 = vpop.permute.xlu0 %481 }
 0x304   :  { %v493_v36 = vsel %vm231_vm1, %v482_v34, 0.0 }
 0x305   :  { %494 = vadd.xlane.f32.xlu0 %v493_v36 }
 0x306   :  { %v484_v37 = vpop.permute.xlu1 %483 }
 0x307   :  { %v486_v38 = vpop.permute.xlu0 %485  ;;  %v496_v39 = vsel %vm231_vm1, %v484_v37, 0.0 }
 0x308   :  { %v499_v40 = vsel %vm231_vm1, %v486_v38, 0.0 }
 0x309   :  { %500 = vadd.xlane.f32.xlu1 %v499_v40  ;;  %497 = vadd.xlane.f32.xlu0 %v496_v39 }
 0x30a   :  { %v488_v42 = vpop.permute.xlu1 %487 }
 0x30b   :  { %v502_v43 = vsel %vm231_vm1, %v488_v42, 0.0 }
 0x30d   :  { %503 = vadd.xlane.f32.xlu1 %v502_v43 }
 0x31e   :  { %257 = vbcast.lane.b32.xlu1 %v255_v47, 256 }
 0x31f   :  { %250 = vbcast.lane.b32.xlu0 %v248_v48, 256 }
 0x322   :  { %264 = vbcast.lane.b32.xlu1 %v262_v51, 256 }
 0x326   :  { %271 = vbcast.lane.b32.xlu1 %v269_v53, 256 }
 0x341   :  { %v234_v54 = vpop.xlane.xlu0 %233 }
 0x345   :  { %v240_v55 = vpop.xlane.xlu0 %239 }
 0x349   :  { %v243_v56 = vpop.xlane.xlu0 %242  ;;  %v237_v57 = vpop.xlane.xlu1 %236 }
 0x392   :  { %v495_v58 = vpop.xlane.xlu0 %494 }
 0x396   :  { %v501_v59 = vpop.xlane.xlu1 %500  ;;  %v498_v60 = vpop.xlane.xlu0 %497 }
 0x39a   :  { %v504_v61 = vpop.xlane.xlu1 %503  ;;  %v251_v62 = vpop.permute.xlu0 %250 }
 0x39b   :  { %v277_v63 = vadd.f32 %v251_v62, %v234_v54  ;;  %v505_v14 = vadd.f32 %v495_v58, %v251_v62 }
 0x39d   :  { %286 = vperm.xlu0 %1312, %v277_v63  }
 0x39e   :  { %v258_v3 = vpop.permute.xlu1 %257 }
 0x39f   :  { %v278_v9 = vadd.f32 %v258_v3, %v237_v57  ;;  %v506_v11 = vadd.f32 %v498_v60, %v258_v3 }
 0x3a2   :  { %v265_v4 = vpop.permute.xlu1 %264 }
 0x3a3   :  { %v279_v6 = vadd.f32 %v265_v4, %v240_v55  ;;  %v507_v8 = vadd.f32 %v501_v59, %v265_v4 }
 0x3a5   :  { %292 = vperm.xlu1 %1311, %v279_v6   ;;  %520 = vperm.xlu0 %1312, %v507_v8  }
 0x3a6   :  { %v272_v13 = vpop.permute.xlu1 %271 }
 0x3a7   :  { %v508_v18 = vadd.f32 %v504_v61, %v272_v13  ;;  %v280_v19 = vadd.f32 %v272_v13, %v243_v56 }
 0x3a9   :  { %289 = vperm.xlu1 %1311, %v278_v9   ;;  %517 = vperm.xlu0 %1312, %v506_v11  }
 0x3ad   :  { %523 = vperm.xlu0 %1312, %v508_v18   ;;  %514 = vperm.xlu1 %1311, %v505_v14  }
 0x3b1   :  { %295 = vperm.xlu1 %1311, %v280_v19  }
 0x41c   :  { %v287_v20 = vpop.permute.xlu0 %286 }
 0x41d   :  { %v302_v30 = vrot.slane %v287_v20, %v1519_v26 }
 0x424   :  { %v293_v21 = vpop.permute.xlu1 %292  ;;  %v521_v22 = vpop.permute.xlu0 %520 }
 0x425   :  { %v536_v33 = vrot.slane %v521_v22, %v1519_v26  ;;  %v310_v37 = vrot.slane %v293_v21, %v1519_v26 }
 0x428   :  { %v290_v24 = vpop.permute.xlu1 %289  ;;  %v518_v25 = vpop.permute.xlu0 %517 }
 0x429   :  { %v306_v27 = vrot.slane %v290_v24, %v1519_v26  ;;  %v532_v31 = vrot.slane %v518_v25, %v1519_v26 }
 0x42b   :  { %v316_v35 = vsel %vm315_vm2, %v306_v27, %v302_v30 }
 0x42c   :  { %v524_v28 = vpop.permute.xlu0 %523  ;;  %v515_v29 = vpop.permute.xlu1 %514  ;;  %v318_v46 = vsel %vm317_vm3, %v310_v37, %v316_v35 }
 0x42d   :  { %v528_v32 = vrot.slane %v515_v29, %v1519_v26  ;;  %v540_v34 = vrot.slane %v524_v28, %v1519_v26 }
 0x42f   :  { %v541_v36 = vsel %vm315_vm2, %v532_v31, %v528_v32 }
 0x430   :  { %v296_v38 = vpop.permute.xlu1 %295  ;;  %v542_v39 = vsel %vm317_vm3, %v536_v33, %v541_v36 }
 0x431   :  { %v314_v40 = vrot.slane %v296_v38, %v1519_v26  ;;  %v543_v42 = vsel %vm319_vm4, %v540_v34, %v542_v39 }
 0x432   :  { %v545_v43 = vsel %vm322_vm5, %v543_v42, -inf }
 0x433   :  { %546 = vmax.xlane.f32.xlu0 %v545_v43  ;;  %v320_v47 = vsel %vm319_vm4, %v314_v40, %v318_v46 }
 0x434   :  { %v323_v48 = vsel %vm322_vm5, %v320_v47, -inf }
 0x435   :  { %324 = vmax.xlane.f32.xlu1 %v323_v48 }
 0x4c0   :  { %v547_v50 = vpop.xlane.xlu0 %546 }
 0x4c1   :  { %v556_v53 = vrot.slane %v547_v50, %v1465_v49  ;;  %v560_v59 = vrot.slane %v547_v50, %v1472_v7  ;;  %v552_v61 = vrot.slane %v547_v50, %v1455_v44  ;;  %v564_v13 = vrot.slane %v547_v50, %v1514_v52 }
 0x4c2   :  { %v325_v51 = vpop.xlane.xlu1 %324 }
 0x4c3   :  { %v330_v54 = vrot.slane %v325_v51, %v1455_v44  ;;  %v334_v55 = vrot.slane %v325_v51, %v1465_v49  ;;  %v338_v56 = vrot.slane %v325_v51, %v1472_v7  ;;  %v570_v60 = vsub.f32 %v506_v11, %v556_v53 }
 0x4c4   :  { %v571_v20 = vsub.f32 %v507_v8, %v560_v59  ;;  %v569_v22 = vsub.f32 %v505_v14, %v552_v61  ;;  %v342_v23 = vrot.slane %v325_v51, %v1514_v52 }
 0x4c5   :  { %v347_v57 = vsub.f32 %v277_v63, %v330_v54  ;;  %v348_v58 = vsub.f32 %v278_v9, %v334_v55  ;;  %v349_v62 = vsub.f32 %v279_v6, %v338_v56  ;;  %v575_v21 = vmul.f32 1.442695, %v570_v60 }
 0x4c6   :  { %v572_v63 = vsub.f32 %v508_v18, %v564_v13  ;;  %v577_v9 = vmul.f32 1.442695, %v571_v20  ;;  %v573_v25 = vmul.f32 1.442695, %v569_v22  ;;  %v350_v11 = vsub.f32 %v280_v19, %v342_v23 }
 0x4c7   :  { %v351_v3 = vmul.f32 1.442695, %v347_v57  ;;  %v353_v4 = vmul.f32 1.442695, %v348_v58  ;;  %v355_v24 = vmul.f32 1.442695, %v349_v62 }
 0x4c8   :  { %v579_v6 = vmul.f32 1.442695, %v572_v63  ;;  %v357_v27 = vmul.f32 1.442695, %v350_v11 }
 0x4c9   :  { %1342 = vpow2.f32 %v351_v3 }
 0x4ca   :  { %1344 = vpow2.f32 %v353_v4 }
 0x4cb   :  { %1346 = vpow2.f32 %v575_v21 }
 0x4cc   :  { %1348 = vpow2.f32 %v355_v24 }
 0x4cd   :  { %1350 = vpow2.f32 %v577_v9 }
 0x4ce   :  { %1352 = vpow2.f32 %v573_v25 }
 0x4cf   :  { %1354 = vpow2.f32 %v579_v6 }
 0x4d0   :  { %1356 = vpow2.f32 %v357_v27 }
 0x4d3   :  { %v1343_v28 = vpop.eup %1342 }
 0x4d4   :  { %v1345_v29 = vpop.eup %1344  ;;  %364 = vperm.xlu0 %1312, %v1343_v28  }
 0x4d5   :  { %367 = vperm.xlu1 %1311, %v1345_v29   ;;  %v1347_v8 = vpop.eup %1346 }
 0x4d6   :  { %v1349_v14 = vpop.eup %1348 }
 0x4d7   :  { %v1351_v18 = vpop.eup %1350 }
 0x4d8   :  { %589 = vperm.xlu0 %1312, %v1347_v8   ;;  %v1353_v30 = vpop.eup %1352 }
 0x4d9   :  { %370 = vperm.xlu1 %1311, %v1349_v14   ;;  %v1355_v19 = vpop.eup %1354 }
 0x4da   :  { %v1357_v31 = vpop.eup %1356 }
 0x4dc   :  { %592 = vperm.xlu0 %1312, %v1351_v18  }
 0x4dd   :  { %586 = vperm.xlu1 %1311, %v1353_v30  }
 0x4e0   :  { %595 = vperm.xlu0 %1312, %v1355_v19  }
 0x4e1   :  { %373 = vperm.xlu1 %1311, %v1357_v31  }
 0x553   :  { %v365_v32 = vpop.permute.xlu0 %364 }
 0x554   :  { %v368_v33 = vpop.permute.xlu1 %367  ;;  %v378_v37 = vrot.slane %v365_v32, %v1519_v26 }
 0x555   :  { %v382_v39 = vrot.slane %v368_v33, %v1519_v26 }
 0x557   :  { %v590_v35 = vpop.permute.xlu0 %589  ;;  %v391_v53 = vsel %vm315_vm2, %v382_v39, %v378_v37 }
 0x558   :  { %v371_v34 = vpop.permute.xlu1 %370  ;;  %v604_v40 = vrot.slane %v590_v35, %v1519_v26 }
 0x559   :  { %v386_v46 = vrot.slane %v371_v34, %v1519_v26 }
 0x55b   :  { %v593_v36 = vpop.permute.xlu0 %592  ;;  %v392_v56 = vsel %vm317_vm3, %v386_v46, %v391_v53 }
 0x55c   :  { %v587_v38 = vpop.permute.xlu1 %586  ;;  %v608_v43 = vrot.slane %v593_v36, %v1519_v26 }
 0x55d   :  { %v600_v42 = vrot.slane %v587_v38, %v1519_v26 }
 0x55f   :  { %v613_v47 = vsel %vm315_vm2, %v604_v40, %v600_v42  ;;  %v596_v48 = vpop.permute.xlu0 %595 }
 0x560   :  { %v374_v50 = vpop.permute.xlu1 %373  ;;  %v612_v51 = vrot.slane %v596_v48, %v1519_v26  ;;  %v614_v55 = vsel %vm317_vm3, %v608_v43, %v613_v47 }
 0x561   :  { %v390_v54 = vrot.slane %v374_v50, %v1519_v26 }
 0x562   :  { %v615_v57 = vsel %vm319_vm4, %v612_v51, %v614_v55 }
 0x563   :  { %v393_v58 = vsel %vm319_vm4, %v390_v54, %v392_v56  ;;  %v617_v59 = vsel %vm322_vm5, %v615_v57, 0.0 }
 0x564   :  { %v395_v60 = vsel %vm322_vm5, %v393_v58, 0.0  ;;  %618 = vadd.xlane.f32.xlu0 %v617_v59 }
 0x565   :  { %396 = vadd.xlane.f32.xlu1 %v395_v60 }
 0x5f1   :  { %v619_v61 = vpop.xlane.xlu0 %618 }
 0x5f2   :  { %v397_v62 = vpop.xlane.xlu1 %396  ;;  %1358 = vrcp.f32 %v619_v61 }
 0x5f3   :  { %1360 = vrcp.f32 %v397_v62 }
 0x5fc   :  { %v1359_v3 = vpop.eup %1358 }
 0x5fd   :  { %v1361_v26 = vpop.eup %1360  ;;  %v629_v23 = vrot.slane %v1359_v3, %v1465_v49  ;;  %v633_v9 = vrot.slane %v1359_v3, %v1472_v7  ;;  %v625_v25 = vrot.slane %v1359_v3, %v1455_v44  ;;  %v637_v27 = vrot.slane %v1359_v3, %v1514_v52 }
 0x5fe   :  { %v407_v4 = vrot.slane %v1361_v26, %v1465_v49  ;;  %v403_v13 = vrot.slane %v1361_v26, %v1455_v44  ;;  %v411_v22 = vrot.slane %v1361_v26, %v1472_v7 }
 0x5ff   :  { %v643_v63 = vmul.f32 %v1347_v8, %v629_v23  ;;  %v644_v11 = vmul.f32 %v1351_v18, %v633_v9  ;;  %v642_v6 = vmul.f32 %v1353_v30, %v625_v25  ;;  %v1320_v8 = vld [vmem:[%s1723_s2 + $0x4] ss:$12 sps:$4 sm:$0xff]   ;;  %v1323_v18 = vld [vmem:[%s1723_s2 + $0x1c] ss:$12 sps:$4 sm:$0xff]  }
 0x600   :  { %v421_v20 = vmul.f32 %v1345_v29, %v407_v4  ;;  %v420_v21 = vmul.f32 %v1343_v28, %v403_v13  ;;  %v422_v24 = vmul.f32 %v1349_v14, %v411_v22  ;;  %v415_v28 = vrot.slane %v1361_v26, %v1514_v52 }
 0x601   :  { %v645_v29 = vmul.f32 %v1355_v19, %v637_v27  ;;  %v1376_v14 = vmov 0.0  }
 0x602   :  { %431 = vperm.xlu1 %1311, %v421_v20   ;;  %426 = vperm.xlu0 %1312, %v420_v21   ;;  %v423_v32 = vmul.f32 %v1357_v31, %v415_v28 }
 0x603   :  { %1269 = vmatprep.subr.bf16.mxu0 %v1376_v14  ;;  %1285 = vmatprep.subr.bf16.mxu1 %v1376_v14 }
 0x604   :  { %1270 = vmatpush3.bf16.msra.mxu0 %v1320_v8  ;;  %1273 = vmatprep.mubr.msk.bf16.mxu0 %vm1377_vm8, %v1376_v14 }
 0x605   :  { %1271 = vmatprep.subr.bf16.mxu0 %v1376_v14  ;;  %1301 = vmatprep.mubr.msk.bf16.mxu1 %vm1377_vm8, %v1376_v14 }
 0x606   :  { %436 = vperm.xlu1 %1311, %v422_v24   ;;  %653 = vperm.xlu0 %1312, %v643_v63  }
 0x608   :  { %1272 = vmatpush3.bf16.msra.mxu0 %v1323_v18 }
 0x609   :  { %1277 = vmatprep.subr.bf16.mxu0 %v1376_v14 }
 0x60a   :  { %658 = vperm.xlu0 %1312, %v644_v11   ;;  %648 = vperm.xlu1 %1311, %v642_v6  }
 0x60e   :  { %663 = vperm.xlu0 %1312, %v645_v29   ;;  %441 = vperm.xlu1 %1311, %v423_v32  }
 0x681   :  { %v432_v30 = vpop.permute.xlu1 %431  ;;  %v427_v19 = vpop.permute.xlu0 %426 }
 0x682   :  { %v445_v31 = vmul.f32 %v432_v30, %v1481_v15  ;;  %v444_v33 = vmul.f32 %v427_v19, %v1478_v12 }
 0x684   :  { %v456_v35 = vsel %vm448_vm6, %v445_v31, 0.0  ;;  %v449_v34 = vsel %vm448_vm6, %v444_v33, 0.0 }
 0x685   :  { %v457_v36 = vrot.slane %v456_v35, 4  ;;  %v450_v37 = vrot.slane %v449_v34, 4  ;;  %v437_v38 = vpop.permute.xlu1 %436  ;;  %v654_v39 = vpop.permute.xlu0 %653 }
 0x686   :  { %v446_v40 = vmul.f32 %v437_v38, %v1476_v10  ;;  %v667_v42 = vmul.f32 %v654_v39, %v1481_v15 }
 0x687   :  { %v458_v43 = vadd.f32 %v457_v36, %v456_v35  ;;  %v451_v46 = vadd.f32 %v450_v37, %v449_v34 }
 0x688   :  { %v463_v47 = vsel %vm448_vm6, %v446_v40, 0.0  ;;  %v678_v48 = vsel %vm670_vm7, %v667_v42, 0.0 }
 0x689   :  { %v459_v50 = vrot.slane %v458_v43, 2  ;;  %v464_v51 = vrot.slane %v463_v47, 4  ;;  %v679_v53 = vrot.slane %v678_v48, 4  ;;  %v649_v54 = vpop.permute.xlu1 %648  ;;  %v659_v55 = vpop.permute.xlu0 %658  ;;  %v452_v58 = vrot.slane %v451_v46, 2 }
 0x68a   :  { %v666_v56 = vmul.f32 %v649_v54, %v1478_v12  ;;  %v668_v57 = vmul.f32 %v659_v55, %v1476_v10 }
 0x68b   :  { %v465_v59 = vadd.f32 %v464_v51, %v463_v47  ;;  %v680_v60 = vadd.f32 %v679_v53, %v678_v48  ;;  %v460_v62 = vadd.f32 %v459_v50, %v458_v43  ;;  %v453_v23 = vadd.f32 %v452_v58, %v451_v46 }
 0x68c   :  { %v671_v15 = vsel %vm670_vm7, %v666_v56, 0.0  ;;  %v685_v61 = vsel %vm670_vm7, %v668_v57, 0.0 }
 0x68d   :  { %v466_v3 = vrot.slane %v465_v59, 2  ;;  %v681_v26 = vrot.slane %v680_v60, 2  ;;  %v442_v4 = vpop.permute.xlu1 %441  ;;  %v664_v13 = vpop.permute.xlu0 %663  ;;  %v672_v20 = vrot.slane %v671_v15, 4  ;;  %v686_v21 = vrot.slane %v685_v61, 4 }
 0x68e   :  { %v447_v22 = vmul.f32 %v442_v4, %v1485_v16  ;;  %v669_v12 = vmul.f32 %v664_v13, %v1485_v16  ;;  %v461_v28 = vrot.slane %v460_v62, 1  ;;  %v454_v8 = vrot.slane %v453_v23, 1 }
 0x68f   :  { %v467_v10 = vadd.f32 %v466_v3, %v465_v59  ;;  %v682_v24 = vadd.f32 %v681_v26, %v680_v60  ;;  %v673_v63 = vadd.f32 %v672_v20, %v671_v15  ;;  %v687_v9 = vadd.f32 %v686_v21, %v685_v61 }
 0x690   :  { %v470_v25 = vsel %vm448_vm6, %v447_v22, 0.0  ;;  %v692_v11 = vsel %vm670_vm7, %v669_v12, 0.0  ;;  %v462_v36 = vadd.f32 %v461_v28, %v460_v62  ;;  %v455_v39 = vadd.f32 %v454_v8, %v453_v23 }
 0x691   :  { %v471_v6 = vrot.slane %v470_v25, 4  ;;  %v693_v27 = vrot.slane %v692_v11, 4  ;;  %v674_v29 = vrot.slane %v673_v63, 2  ;;  %v688_v32 = vrot.slane %v687_v9, 2 }
 0x692   :  { %v468_v19 = vrot.slane %v467_v10, 1  ;;  %v683_v31 = vrot.slane %v682_v24, 1  ;;  %v703_v56 = vsel %vm315_vm2, %v462_v36, %v455_v39  ;;  %v788_v20 = vrot.slane %v1460_v45, %v1514_v52 }
 0x693   :  { %v472_v18 = vadd.f32 %v471_v6, %v470_v25  ;;  %v694_v30 = vadd.f32 %v693_v27, %v692_v11  ;;  %v675_v16 = vadd.f32 %v674_v29, %v673_v63  ;;  %v689_v33 = vadd.f32 %v688_v32, %v687_v9 }
 0x694   :  { %v469_v43 = vadd.f32 %v468_v19, %v467_v10  ;;  %v684_v46 = vadd.f32 %v683_v31, %v682_v24 }
 0x695   :  { %v473_v35 = vrot.slane %v472_v18, 2  ;;  %v695_v34 = vrot.slane %v694_v30, 2  ;;  %v676_v37 = vrot.slane %v675_v16, 1  ;;  %v690_v38 = vrot.slane %v689_v33, 1 }
 0x696   :  { %v704_v57 = vsel %vm317_vm3, %v469_v43, %v703_v56 }
 0x697   :  { %v474_v40 = vadd.f32 %v473_v35, %v472_v18  ;;  %v696_v42 = vadd.f32 %v695_v34, %v694_v30  ;;  %v677_v47 = vadd.f32 %v676_v37, %v675_v16  ;;  %v691_v48 = vadd.f32 %v690_v38, %v689_v33 }
 0x699   :  { %v475_v50 = vrot.slane %v474_v40, 1  ;;  %v697_v51 = vrot.slane %v696_v42, 1  ;;  %v713_v53 = vsel %vm315_vm2, %v684_v46, %v677_v47 }
 0x69a   :  { %v714_v58 = vsel %vm317_vm3, %v691_v48, %v713_v53 }
 0x69b   :  { %v476_v54 = vadd.f32 %v475_v50, %v474_v40  ;;  %v698_v55 = vadd.f32 %v697_v51, %v696_v42 }
 0x69d   :  { %v705_v59 = vsel %vm319_vm4, %v476_v54, %v704_v57  ;;  %v715_v60 = vsel %vm319_vm4, %v698_v55, %v714_v58  ;;  %v1324_v57 = vld [vmem:[%s1723_s2 + $0x8] ss:$12 sps:$4 sm:$0xff]   ;;  %v1325_v58 = vld [vmem:[%s1723_s2 + $0x20] ss:$12 sps:$4 sm:$0xff]  }
 0x69e   :  { %v1313_v15 = vpack.i.bf16 %v715_v60, %v705_v59 }
 0x6a0   :  { %1314 = vrot.lane.b32.xlu1 %v1313_v15, %s1378_s13 }
 0x712   :  { %v1315_v61 = vpop.permute.xlu1 %1314 }
 0x713   :  { %v1317_v62 = vunpack.i.h.bf16 %v1315_v61  ;;  %v1316_v3 = vunpack.i.l.bf16 %v1315_v61 }
 0x715   :  { %v719_v26 = vsel %vm231_vm1, %v1316_v3, %v1317_v62 }
 0x716   :  { %v720_v4 = vpack.c.bf16 %v719_v26, %v719_v26  ;;  %v869_v26 = vsub.s32 4, %v1452_v41 }
 0x718   :  { %1274 = vmatmul.mubr.msk.bf16.vlgmr.msra.gmra.mrb[4].mxu0 %vm52_vm0, %v720_v4  ;;  %v877_v4 = vsub.s32 5, %v1452_v41 }
 0x719   :  { %1281 = vmatprep.mubr.msk.bf16.mxu0 %vm1377_vm8, %v1376_v14  ;;  %1278 = vmatpush3.bf16.msra.mxu0 %v1324_v57  ;;  %v1333_v57 = vld [vmem:[%s1726_s3 + $0x38] sm:$0xff]  }
 0x71a   :  { %1279 = vmatprep.subr.bf16.mxu0 %v1376_v14 }
 0x71d   :  { %1280 = vmatpush3.bf16.msra.mxu0 %v1325_v58  ;;  %v889_v58 = vsub.s32 6, %v1452_v41 }
 0x7eb   :  { %v766_v13 = vpop.f32.mrb[4].mxu0 }
 0x7ec   :  { %v773_v21 = vrot.slane %v766_v13, 1  ;;  %v774_v22 = vrot.slane %v766_v13, 2  ;;  %v775_v12 = vrot.slane %v766_v13, 3  ;;  %v776_v23 = vrot.slane %v766_v13, 4  ;;  %v1275_v10 = vpop.f32.mrb[5].mxu0 }
 0x7ed   :  { %v769_v24 = vpop.f32.mrb[6].mxu0 }
 0x7ee   :  { %v782_v63 = vadd.f32 %v774_v22, %v1422_v2  ;;  %v783_v9 = vadd.f32 %v775_v12, %v1417_v1  ;;  %v784_v25 = vadd.f32 %v776_v23, %v1431_v5  ;;  %v1276_v11 = vpop.f32.mrb[7].mxu0  ;;  %v781_v6 = vadd.f32 %v773_v21, %v1412_v0 }
 0x7ef   :  { %v870_v22 = vrot.slane %v1460_v45, %v869_v26  ;;  %v878_v23 = vrot.slane %v1460_v45, %v877_v4 }
 0x7f0   :  { %v1615_v27 = vadd.f32 %v788_v20, %v782_v63  ;;  %v1617_v28 = vadd.f32 %v788_v20, %v783_v9  ;;  %v1619_v29 = vadd.f32 %v788_v20, %v784_v25  ;;  %v1621_v32 = vadd.f32 %v788_v20, %v781_v6 }
 0x7f2   :  { %v805_v8 = vsel %vm804_vm9, %v1621_v32, 0.0  ;;  %v797_v2 = vrot.slane %v1615_v27, 7  ;;  %v798_v1 = vrot.slane %v1617_v28, 6  ;;  %v800_v5 = vrot.slane %v1619_v29, 5 }
 0x7f3   :  { %806 = vadd.xlane.f32.xlu1 %v805_v8 }
 0x7f4   :  { %v799_v0 = vsel %vm315_vm2, %v798_v1, %v797_v2 }
 0x7f5   :  { %v801_v18 = vsel %vm317_vm3, %v800_v5, %v799_v0 }
 0x7f6   :  { %v809_v30 = vsel %vm808_vm10, %v801_v18, 0.0 }
 0x7f7   :  { %810 = vadd.xlane.f32.xlu0 %v809_v30 }
 0x880   :  { %v807_v16 = vpop.xlane.xlu1 %806 }
 0x881   :  { %v812_v36 = vmul.f32 0.03125, %v807_v16 }
 0x883   :  { %v823_v46 = vsub.f32 %v1621_v32, %v812_v36 }
 0x884   :  { %v811_v19 = vpop.xlane.xlu0 %810 }
 0x885   :  { %v813_v31 = vmul.f32 0.03125, %v811_v19  ;;  %v827_v55 = vmul.f32 %v823_v46, %v823_v46 }
 0x887   :  { %v816_v33 = vrot.slane %v813_v31, 1  ;;  %v817_v35 = vrot.slane %v813_v31, 2  ;;  %v818_v34 = vrot.slane %v813_v31, 3  ;;  %v842_v56 = vsel %vm804_vm9, %v827_v55, 0.0  ;;  %v1331_v55 = vld [vmem:[%s1726_s3 + $0x28] sm:$0xff]  }
 0x889   :  { %v824_v37 = vsub.f32 %v1615_v27, %v816_v33  ;;  %v825_v38 = vsub.f32 %v1617_v28, %v817_v35  ;;  %v826_v39 = vsub.f32 %v1619_v29, %v818_v34 }
 0x88b   :  { %v828_v40 = vmul.f32 %v824_v37, %v824_v37  ;;  %v829_v42 = vmul.f32 %v825_v38, %v825_v38  ;;  %v830_v43 = vmul.f32 %v826_v39, %v826_v39 }
 0x88d   :  { %v835_v47 = vrot.slane %v828_v40, 7  ;;  %v836_v48 = vrot.slane %v829_v42, 6  ;;  %v838_v50 = vrot.slane %v830_v43, 5 }
 0x88f   :  { %v837_v51 = vsel %vm315_vm2, %v836_v48, %v835_v47  ;;  %v1326_v48 = vld [vmem:[%s1726_s3] sm:$0xff]  }
 0x890   :  { %v839_v53 = vsel %vm317_vm3, %v838_v50, %v837_v51  ;;  %1286 = vmatpush3.bf16.msra.mxu1 %v1326_v48  ;;  %v1327_v50 = vld [vmem:[%s1726_s3 + $0x8] sm:$0xff]   ;;  %v1328_v51 = vld [vmem:[%s1726_s3 + $0x10] sm:$0xff]  }
 0x891   :  { %v845_v54 = vsel %vm808_vm10, %v839_v53, 0.0  ;;  %1287 = vmatprep.subr.bf16.mxu1 %v1376_v14  ;;  %v1329_v53 = vld [vmem:[%s1726_s3 + $0x18] sm:$0xff]  }
 0x892   :  { %846 = vadd.xlane.f32.xlu0 %v845_v54  ;;  %v1330_v54 = vld [vmem:[%s1726_s3 + $0x20] sm:$0xff]  }
 0x894   :  { %1288 = vmatpush3.bf16.msra.mxu1 %v1327_v50 }
 0x895   :  { %1289 = vmatprep.subr.bf16.mxu1 %v1376_v14 }
 0x896   :  { %843 = vadd.xlane.f32.xlu0 %v842_v56  ;;  %v1332_v56 = vld [vmem:[%s1726_s3 + $0x30] sm:$0xff]  }
 0x898   :  { %1290 = vmatpush3.bf16.msra.mxu1 %v1328_v51 }
 0x899   :  { %1291 = vmatprep.subr.bf16.mxu1 %v1376_v14 }
 0x89c   :  { %1292 = vmatpush3.bf16.msra.mxu1 %v1329_v53 }
 0x89d   :  { %1293 = vmatprep.subr.bf16.mxu1 %v1376_v14 }
 0x8a0   :  { %1294 = vmatpush3.bf16.msra.mxu1 %v1330_v54 }
 0x8a1   :  { %1295 = vmatprep.subr.bf16.mxu1 %v1376_v14 }
 0x8a4   :  { %1296 = vmatpush3.bf16.msra.mxu1 %v1331_v55 }
 0x8a5   :  { %1297 = vmatprep.subr.bf16.mxu1 %v1376_v14 }
 0x8a8   :  { %1298 = vmatpush3.bf16.msra.mxu1 %v1332_v56 }
 0x8a9   :  { %1299 = vmatprep.subr.bf16.mxu1 %v1376_v14 }
 0x8ac   :  { %1300 = vmatpush3.bf16.msra.mxu1 %v1333_v57 }
 0x91f   :  { %v847_v59 = vpop.xlane.xlu0 %846 }
 0x920   :  { %v849_v60 = vmul.f32 0.03125, %v847_v59  ;;  %v890_v59 = vrot.slane %v1460_v45, %v889_v58  ;;  %v1372_v45 = vld [vmem:[%s1724_s4] sm:$0xff] }
 0x922   :  { %v851_v15 = vadd.f32 1e-05, %v849_v60 }
 0x923   :  { %v844_v61 = vpop.xlane.xlu0 %843 }
 0x924   :  { %1362 = vrsqrt.f32 %v851_v15  ;;  %v848_v62 = vmul.f32 0.03125, %v844_v61 }
 0x926   :  { %v850_v3 = vadd.f32 1e-05, %v848_v62 }
 0x928   :  { %1364 = vrsqrt.f32 %v850_v3 }
 0x92e   :  { %v1363_v13 = vpop.eup %1362 }
 0x92f   :  { %v856_v20 = vrot.slane %v1363_v13, 1  ;;  %v857_v21 = vrot.slane %v1363_v13, 2  ;;  %v858_v12 = vrot.slane %v1363_v13, 3 }
 0x931   :  { %v864_v10 = vmul.f32 %v856_v20, %v824_v37  ;;  %v865_v24 = vmul.f32 %v857_v21, %v825_v38  ;;  %v866_v63 = vmul.f32 %v858_v12, %v826_v39 }
 0x932   :  { %v1365_v9 = vpop.eup %1364 }
 0x933   :  { %v863_v25 = vmul.f32 %v1365_v9, %v823_v46  ;;  %v872_v11 = vmul.f32 %v870_v22, %v864_v10  ;;  %v873_v6 = vmul.f32 %v870_v22, %v865_v24  ;;  %v874_v8 = vmul.f32 %v870_v22, %v866_v63 }
 0x934   :  { %v975_v63 = vrot.slane %v1372_v45, %v1489_v17 }
 0x935   :  { %v871_v2 = vmul.f32 %v870_v22, %v863_v25  ;;  %v880_v1 = vadd.f32 %v878_v23, %v872_v11  ;;  %v881_v5 = vadd.f32 %v878_v23, %v873_v6  ;;  %v882_v0 = vadd.f32 %v878_v23, %v874_v8 }
 0x937   :  { %v879_v18 = vadd.f32 %v878_v23, %v871_v2  ;;  %v884_v30 = vpack.c.bf16 %v880_v1, %v880_v1  ;;  %v885_v19 = vpack.c.bf16 %v881_v5, %v881_v5  ;;  %v886_v31 = vpack.c.bf16 %v882_v0, %v882_v0 }
 0x939   :  { %v883_v16 = vpack.c.bf16 %v879_v18, %v879_v18  ;;  %v896_v33 = vunpack.c.l.b16 %v884_v30  ;;  %v897_v35 = vunpack.c.l.b16 %v885_v19  ;;  %v898_v36 = vunpack.c.l.b16 %v886_v31 }
 0x93b   :  { %v895_v34 = vunpack.c.l.b16 %v883_v16  ;;  %v900_v38 = vrot.slane %v896_v33, 6  ;;  %v902_v39 = vrot.slane %v897_v35, 5  ;;  %v904_v42 = vrot.slane %v898_v36, 4 }
 0x93d   :  { %v899_v37 = vrot.slane %v895_v34, 7 }
 0x93f   :  { %v901_v40 = vsel %vm315_vm2, %v900_v38, %v899_v37 }
 0x940   :  { %v903_v43 = vsel %vm317_vm3, %v902_v39, %v901_v40 }
 0x941   :  { %v905_v46 = vsel %vm319_vm4, %v904_v42, %v903_v43 }
 0x942   :  { %v906_v47 = vpack.c.b16 %v905_v46, %v905_v46 }
 0x944   :  { %1282 = vmatmul.mubr.msk.bf16.vlgmr.msra.gmra.mrb[8].mxu0 %vm52_vm0, %v906_v47 }
 0xa17   :  { %v956_v60 = vpop.f32.mrb[8].mxu0 }
 0xa18   :  { %v957_v15 = vadd.f32 %v956_v60, %v890_v59  ;;  %v1283_v61 = vpop.f32.mrb[9].mxu0 }
 0xa19   :  { %v959_v62 = vpop.f32.mrb[10].mxu0 }
 0xa1a   :  { %v962_v3 = vmul.f32 %v957_v15, %v957_v15  ;;  %v1284_v4 = vpop.f32.mrb[11].mxu0 }
 0xa1c   :  { %v963_v13 = vmul.f32 %v962_v3, %v957_v15 }
 0xa1e   :  { %v964_v20 = vmul.f32 0.044715, %v963_v13  ;;  %v51_v13 = vld [vmem:[%s1724_s4 + $0x8] sm:$0xff] }
 0xa20   :  { %v965_v21 = vadd.f32 %v964_v20, %v957_v15 }
 0xa22   :  { %v966_v22 = vmul.f32 0.7978846, %v965_v21  ;;  %v1152_v21 = vrot.slane %v51_v13, %v1455_v44 }
 0xa24   :  { %1366 = vtanh.f32 %v966_v22 }
 0xa2e   :  { %v1367_v12 = vpop.eup %1366 }
 0xa2f   :  { %v968_v23 = vadd.f32 1.0, %v1367_v12 }
 0xa31   :  { %v969_v10 = vmul.f32 0.5, %v968_v23  ;;  %v1160_v23 = vrot.slane %v51_v13, %v1465_v49 }
 0xa33   :  { %v970_v14 = vmul.f32 %v969_v10, %v957_v15 }
 0xa35   :  { %v971_v24 = vpack.c.bf16 %v970_v14, %v970_v14  ;;  %v1168_v14 = vrot.slane %v51_v13, %v1472_v7 }
 0xa37   :  { %1302 = vmatmul.mubr.bf16.vlgmr.msra.gmra.mrb[0].mxu1 %v971_v24 }
 0xb0a   :  { %v1058_v9 = vpop.f32.mrb[0].mxu1 }
 0xb0b   :  { %v1059_v25 = vadd.f32 %v1058_v9, %v975_v63  ;;  %v1303_v11 = vpop.f32.mrb[1].mxu1 }
 0xb0c   :  { %v1061_v6 = vpop.f32.mrb[2].mxu1 }
 0xb0d   :  { %v1066_v8 = vrot.slane %v1059_v25, 2  ;;  %v1067_v2 = vrot.slane %v1059_v25, 3  ;;  %v1068_v1 = vrot.slane %v1059_v25, 4  ;;  %v1304_v5 = vpop.f32.mrb[3].mxu1  ;;  %v1065_v0 = vrot.slane %v1059_v25, 1 }
 0xb0e   :  { %v1186_v5 = vrot.slane %v51_v13, %v1514_v52  ;;  %v1205_v52 = vrot.slane %v51_v13, %v869_v26 }
 0xb0f   :  { %v1073_v18 = vadd.f32 %v1065_v0, %v1621_v32  ;;  %v1074_v30 = vadd.f32 %v1066_v8, %v1615_v27  ;;  %v1075_v19 = vadd.f32 %v1067_v2, %v1617_v28  ;;  %v1076_v31 = vadd.f32 %v1068_v1, %v1619_v29 }
 0xb11   :  { %v1088_v16 = vsel %vm804_vm9, %v1073_v18, 0.0  ;;  %v1081_v17 = vrot.slane %v1074_v30, 7  ;;  %v1082_v33 = vrot.slane %v1075_v19, 6  ;;  %v1084_v35 = vrot.slane %v1076_v31, 5 }
 0xb12   :  { %1089 = vadd.xlane.f32.xlu1 %v1088_v16 }
 0xb13   :  { %v1083_v34 = vsel %vm315_vm2, %v1082_v33, %v1081_v17 }
 0xb14   :  { %v1085_v36 = vsel %vm317_vm3, %v1084_v35, %v1083_v34 }
 0xb15   :  { %v1091_v37 = vsel %vm808_vm10, %v1085_v36, 0.0 }
 0xb16   :  { %1092 = vadd.xlane.f32.xlu0 %v1091_v37 }
 0xb9f   :  { %v1090_v32 = vpop.xlane.xlu1 %1089 }
 0xba0   :  { %v1094_v38 = vmul.f32 0.03125, %v1090_v32 }
 0xba2   :  { %v1105_v27 = vsub.f32 %v1073_v18, %v1094_v38 }
 0xba3   :  { %v1093_v39 = vpop.xlane.xlu0 %1092 }
 0xba4   :  { %v1095_v28 = vmul.f32 0.03125, %v1093_v39  ;;  %v1109_v40 = vmul.f32 %v1105_v27, %v1105_v27 }
 0xba6   :  { %v1098_v29 = vrot.slane %v1095_v28, 1  ;;  %v1099_v42 = vrot.slane %v1095_v28, 2  ;;  %v1100_v43 = vrot.slane %v1095_v28, 3  ;;  %v1124_v46 = vsel %vm804_vm9, %v1109_v40, 0.0 }
 0xba7   :  { %1125 = vadd.xlane.f32.xlu1 %v1124_v46 }
 0xba8   :  { %v1106_v47 = vsub.f32 %v1074_v30, %v1098_v29  ;;  %v1107_v48 = vsub.f32 %v1075_v19, %v1099_v42  ;;  %v1108_v50 = vsub.f32 %v1076_v31, %v1100_v43 }
 0xbaa   :  { %v1110_v51 = vmul.f32 %v1106_v47, %v1106_v47  ;;  %v1111_v53 = vmul.f32 %v1107_v48, %v1107_v48  ;;  %v1112_v54 = vmul.f32 %v1108_v50, %v1108_v50 }
 0xbac   :  { %v1117_v55 = vrot.slane %v1110_v51, 7  ;;  %v1118_v56 = vrot.slane %v1111_v53, 6  ;;  %v1120_v57 = vrot.slane %v1112_v54, 5 }
 0xbae   :  { %v1119_v58 = vsel %vm315_vm2, %v1118_v56, %v1117_v55 }
 0xbaf   :  { %v1121_v59 = vsel %vm317_vm3, %v1120_v57, %v1119_v58 }
 0xbb0   :  { %v1127_v60 = vsel %vm808_vm10, %v1121_v59, 0.0 }
 0xbb1   :  { %1128 = vadd.xlane.f32.xlu0 %v1127_v60 }
 0xc34   :  { %v1126_v15 = vpop.xlane.xlu1 %1125 }
 0xc35   :  { %v1130_v61 = vmul.f32 0.03125, %v1126_v15 }
 0xc37   :  { %v1132_v62 = vadd.f32 1e-05, %v1130_v61 }
 0xc39   :  { %1368 = vrsqrt.f32 %v1132_v62 }
 0xc3e   :  { %v1129_v3 = vpop.xlane.xlu0 %1128 }
 0xc3f   :  { %v1131_v4 = vmul.f32 0.03125, %v1129_v3 }
 0xc41   :  { %v1133_v20 = vadd.f32 1e-05, %v1131_v4 }
 0xc43   :  { %v1369_v22 = vpop.eup %1368  ;;  %1370 = vrsqrt.f32 %v1133_v20 }
 0xc44   :  { %v1145_v12 = vmul.f32 %v1369_v22, %v1105_v27 }
 0xc46   :  { %v1153_v10 = vmul.f32 %v1152_v21, %v1145_v12 }
 0xc48   :  { %v1161_v24 = vadd.f32 %v1160_v23, %v1153_v10 }
 0xc4a   :  { %v1169_v45 = vmul.f32 %v1168_v14, %v1161_v24 }
 0xc4c   :  { %v1176_v63 = vsel %vm804_vm9, %v1169_v45, 0.0 }
 0xc4d   :  { %v1371_v9 = vpop.eup %1370  ;;  %1177 = vadd.xlane.f32.xlu0 %v1176_v63 }
 0xc4e   :  { %v1139_v25 = vrot.slane %v1371_v9, 2  ;;  %v1138_v11 = vrot.slane %v1371_v9, 1  ;;  %v1140_v6 = vrot.slane %v1371_v9, 3 }
 0xc50   :  { %v1147_v8 = vmul.f32 %v1139_v25, %v1107_v48  ;;  %v1146_v2 = vmul.f32 %v1138_v11, %v1106_v47  ;;  %v1148_v44 = vmul.f32 %v1140_v6, %v1108_v50 }
 0xc52   :  { %v1155_v1 = vmul.f32 %v1152_v21, %v1147_v8  ;;  %v1154_v0 = vmul.f32 %v1152_v21, %v1146_v2  ;;  %v1156_v49 = vmul.f32 %v1152_v21, %v1148_v44 }
 0xc54   :  { %v1163_v18 = vadd.f32 %v1160_v23, %v1155_v1  ;;  %v1162_v30 = vadd.f32 %v1160_v23, %v1154_v0  ;;  %v1164_v7 = vadd.f32 %v1160_v23, %v1156_v49 }
 0xc56   :  { %v1187_v19 = vmul.f32 %v1186_v5, %v1163_v18  ;;  %v1170_v31 = vmul.f32 %v1168_v14, %v1162_v30  ;;  %v1188_v16 = vmul.f32 %v1186_v5, %v1164_v7 }
 0xc58   :  { %v1194_v17 = vsel %vm804_vm9, %v1187_v19, 0.0  ;;  %v1173_v33 = vrot.slane %v1170_v31, 7  ;;  %v1191_v34 = vrot.slane %v1188_v16, 7 }
 0xc59   :  { %1195 = vadd.xlane.f32.xlu0 %v1194_v17 }
 0xc5a   :  { %v1180_v35 = vsel %vm1179_vm11, %v1173_v33, 0.0  ;;  %v1197_v36 = vsel %vm1179_vm11, %v1191_v34, 0.0 }
 0xc5b   :  { %1181 = vadd.xlane.f32.xlu1 %v1180_v35 }
 0xc5f   :  { %1198 = vadd.xlane.f32.xlu1 %v1197_v36 }
 0xcda   :  { %v1178_v37 = vpop.xlane.xlu0 %1177 }
 0xce6   :  { %v1196_v32 = vpop.xlane.xlu0 %1195 }
 0xce7   :  { %v1200_v38 = vadd.f32 %v1196_v32, %v1178_v37 }
 0xce8   :  { %v1182_v27 = vpop.xlane.xlu1 %1181 }
 0xce9   :  { %v1206_v39 = vadd.f32 %v1205_v52, %v1200_v38 }
 0xceb   :  { %1210 = vperm.xlu0 %1312, %v1206_v39  }
 0xcec   :  { %v1199_v28 = vpop.xlane.xlu1 %1198 }
 0xced   :  { %v1201_v40 = vadd.f32 %v1199_v28, %v1182_v27 }
 0xcef   :  { %v1207_v29 = vadd.f32 %v1205_v52, %v1201_v40 }
 0xcf1   :  { %1215 = vperm.xlu1 %1311, %v1207_v29  }
 0xd6a   :  { %v1211_v42 = vpop.permute.xlu0 %1210 }
 0xd6b   :  { %1218 = vst [vmem:[%s1727_s5 - $0x7] sm:$0x80] %v1211_v42 }
 0xd70   :  { %v1216_v43 = vpop.permute.xlu1 %1215 }
 0xd71   :  { %1219 = vst [vmem:[%s1727_s5 + $0x1] sm:$0x1] %v1216_v43 }

</bundles_post_ra>
